<compile_context>
chip_gen: v7x
topology: tpu7x:2x2x1
jax: 0.10.0
libtpu: 0.0.40
codegen_flags: <defaults>
</compile_context>

<pallas_src>
import functools

import jax
import jax.numpy as jnp
from jax.experimental import pallas as pl
from jax.experimental.pallas import tpu as pltpu

# -------------------- "cfg" (synthetic, deterministic) --------------------
NUM_CLASSES = 8
WEAK_SUPERVISE = True
BOX_OUT_STREAMS = 2
CLS_AGNOSTIC_BBOX_REG = False
TRAINING = False  # eval mode -> softmax on cls_score

BBOX_OUT = 4 * 2 if CLS_AGNOSTIC_BBOX_REG else 4 * NUM_CLASSES
TOTAL_OUT = NUM_CLASSES + NUM_CLASSES + BBOX_OUT   # cls | det | bbox = 48
OUT_PAD = 128                                      # pad to one full lane width


def _round_up(n, m):
    return ((n + m - 1) // m) * m


def _choose_tn(n, d, tn_max, vmem_budget=24 * 1024 * 1024):
    """Pick a row-tile that fits: 2x double-buffered x tile + resident W/b +
    2x double-buffered out tile <= budget, clamped to [8, tn_max] and to the
    (sublane-rounded) problem size."""
    avail = vmem_budget - (d * OUT_PAD + OUT_PAD) * 4        # resident W + b
    per_row = 2 * (d + OUT_PAD) * 4                          # x tile + out tile (x2 buf)
    tn = max(8, min(tn_max, avail // max(per_row, 1)))
    tn = (tn // 8) * 8
    tn = min(tn, _round_up(max(n, 1), 8))
    return int(max(tn, 8))


# ------------------------------ Pallas kernel ------------------------------
def _fused_head_kernel(x_ref, w_ref, b_ref, out_ref):
    # x_ref: (TN, D)   w_ref: (D, OUT_PAD)   b_ref: (1, OUT_PAD)
    x = x_ref[...]
    logits = jnp.dot(x, w_ref[...], preferred_element_type=jnp.float32)
    logits = logits + b_ref[...]

    # Masked softmax over the first NUM_CLASSES lanes only (eval mode).
    col = jax.lax.broadcasted_iota(jnp.int32, logits.shape, 1)
    is_cls = col < NUM_CLASSES
    cls_masked = jnp.where(is_cls, logits, jnp.float32(-jnp.inf))
    m = jnp.max(cls_masked, axis=1, keepdims=True)           # XLU cross-lane max
    e = jnp.exp(cls_masked - m)                               # 0 in non-cls lanes (EUP)
    denom = jnp.sum(e, axis=1, keepdims=True)                 # XLU cross-lane sum
    sm = e * pl.reciprocal(denom, approx=False)               # exact: keeps 1e-5 tol

    # Single lane-dense (TN, 128) unmasked store.
    out_ref[...] = jnp.where(is_cls, sm, logits)


# ------------------------ parameter packing (one-time) ---------------------
def pack_params(params):
    """Pre-transpose, concatenate and pad the three heads once (off hot path)."""
    w_fused = jnp.concatenate(
        [params["cls_w"].T, params["det_w"].T, params["bbox_w"].T], axis=1
    )  # (D, TOTAL_OUT)
    b_fused = jnp.concatenate(
        [params["cls_b"], params["det_b"], params["bbox_b"]]
    )  # (TOTAL_OUT,)
    pad = OUT_PAD - w_fused.shape[1]
    w_fused = jnp.pad(w_fused, ((0, 0), (0, pad))).astype(jnp.float32)
    b_fused = jnp.pad(b_fused, (0, pad)).reshape(1, OUT_PAD).astype(jnp.float32)
    return w_fused, b_fused


# -------------------------------- wrapper -----------------------------------
@functools.partial(jax.jit, static_argnames=("tn_max",))
def fast_rcnn_outputs_forward(x, w_fused, b_fused, tn_max=512):
    """x: (N, D, 1, 1) or (N, D). Returns (cls_score, det_score, bbox_pred)."""
    if x.ndim == 4:
        x = x[:, :, 0, 0]  # squeeze(3).squeeze(2)
    x = x.astype(jnp.float32)
    N, D = x.shape

    TN = _choose_tn(N, D, tn_max)
    N_pad = _round_up(N, TN)
    if N_pad != N:
        x = jnp.pad(x, ((0, N_pad - N), (0, 0)))

    grid = (N_pad // TN,)

    cost = pl.CostEstimate(
        flops=2 * N_pad * D * OUT_PAD,
        transcendentals=N_pad * OUT_PAD,
        bytes_accessed=(N_pad * D + D * OUT_PAD + OUT_PAD + N_pad * OUT_PAD) * 4,
    )

    out = pl.pallas_call(
        _fused_head_kernel,
        out_shape=jax.ShapeDtypeStruct((N_pad, OUT_PAD), jnp.float32),
        grid=grid,
        in_specs=[
            pl.BlockSpec((TN, D), lambda i: (i, 0)),        # x: tiled over N (pipelined)
            pl.BlockSpec((D, OUT_PAD), lambda i: (0, 0)),   # fused W: VMEM-resident
            pl.BlockSpec((1, OUT_PAD), lambda i: (0, 0)),   # fused b: VMEM-resident
        ],
        out_specs=pl.BlockSpec((TN, OUT_PAD), lambda i: (i, 0)),
        compiler_params=pltpu.CompilerParams(
            dimension_semantics=("parallel",),              # rows split across TCs
            vmem_limit_bytes=48 * 1024 * 1024,
        ),
        cost_estimate=cost,
    )(x, w_fused, b_fused)

    cls_score = out[:N, :NUM_CLASSES]
    det_score = out[:N, NUM_CLASSES:2 * NUM_CLASSES]
    bbox_pred = out[:N, 2 * NUM_CLASSES:2 * NUM_CLASSES + BBOX_OUT]
    return cls_score, det_score, bbox_pred


# -------------------------- deterministic init -----------------------------
def init_params(key, dim_in):
    k1, k2, k3 = jax.random.split(key, 3)
    return {
        "cls_w": 0.01 * jax.random.normal(k1, (NUM_CLASSES, dim_in), jnp.float32),
        "cls_b": jnp.zeros((NUM_CLASSES,), jnp.float32),
        "det_w": 0.01 * jax.random.normal(k2, (NUM_CLASSES, dim_in), jnp.float32),
        "det_b": jnp.zeros((NUM_CLASSES,), jnp.float32),
        "bbox_w": 0.001 * jax.random.normal(k3, (BBOX_OUT, dim_in), jnp.float32),
        "bbox_b": jnp.zeros((BBOX_OUT,), jnp.float32),
    }


# ------------------------------- reference ---------------------------------
def reference_forward(x, params):
    if x.ndim == 4:
        x = x[:, :, 0, 0]
    cls = x @ params["cls_w"].T + params["cls_b"]
    if not TRAINING:
        cls = jax.nn.softmax(cls, axis=1)
    det = x @ params["det_w"].T + params["det_b"]
    bbox = x @ params["bbox_w"].T + params["bbox_b"]
    return cls, det, bbox


def _check(N, dim_in, key):
    kx, kp = jax.random.split(key)
    # x mimics the typical 4-D head input (N, dim_in, 1, 1)
    x = jax.random.normal(kx, (N, dim_in, 1, 1), jnp.float32)
    params = init_params(kp, dim_in)

    # One-time parameter packing (transpose + concat + pad), outside the hot path.
    w_fused, b_fused = pack_params(params)

    cls_score, det_score, bbox_pred = fast_rcnn_outputs_forward(x, w_fused, b_fused)
    jax.block_until_ready((cls_score, det_score, bbox_pred))

    ref_cls, ref_det, ref_bbox = reference_forward(x, params)
    assert jnp.allclose(cls_score, ref_cls, atol=1e-5, rtol=1e-5)
    assert jnp.allclose(det_score, ref_det, atol=1e-5, rtol=1e-5)
    assert jnp.allclose(bbox_pred, ref_bbox, atol=1e-5, rtol=1e-5)


if __name__ == "__main__":
    key = jax.random.PRNGKey(0)
    k1, k2 = jax.random.split(key)
    _check(N=8, dim_in=32, key=k1)    # small, exact-tile case
    _check(N=37, dim_in=64, key=k2)   # exercises row-padding path
    print("KERNEL_OK")
</pallas_src>

<mosaic_0001>
module attributes {stable_mosaic.version = 11 : i64} {
  func.func @_fused_head_kernel(%arg0: i32, %arg1: memref<8x32xf32, #tpu.memory_space<vmem>>, %arg2: memref<32x128xf32, #tpu.memory_space<vmem>>, %arg3: memref<1x128xf32, #tpu.memory_space<vmem>>, %arg4: memref<8x128xf32, #tpu.memory_space<vmem>>) attributes {dimension_semantics = [#tpu.dimension_semantics<parallel>], iteration_bounds = array<i64: 1>, scalar_prefetch = 0 : i64, scratch_operands = 0 : i64, tpu.core_type = #tpu.core_type<tc>, window_params = [{transform_indices = @transform_0, window_bounds = array<i64: 8, 32>}, {pipeline_mode = #tpu.pipeline_mode<synchronous>, transform_indices = @transform_1, window_bounds = array<i64: 32, 128>}, {pipeline_mode = #tpu.pipeline_mode<synchronous>, transform_indices = @transform_2, window_bounds = array<i64: 1, 128>}, {transform_indices = @transform_3, window_bounds = array<i64: 8, 128>}]} {
    %c0 = arith.constant 0 : index
    %c0_0 = arith.constant 0 : index
    %0 = vector.load %arg1[%c0, %c0_0] : memref<8x32xf32, #tpu.memory_space<vmem>>, vector<8x32xf32>
    %c0_1 = arith.constant 0 : index
    %c0_2 = arith.constant 0 : index
    %1 = vector.load %arg2[%c0_1, %c0_2] : memref<32x128xf32, #tpu.memory_space<vmem>>, vector<32x128xf32>
    %cst = arith.constant dense<0.000000e+00> : vector<8x128xf32>
    %2 = tpu.matmul %0, %1, %cst {dimension_numbers = #tpu.dot_dimension_numbers<[1], [0], [0], [1], [0, 0, 1, 1], [], []>} : vector<8x32xf32>, vector<32x128xf32>, vector<8x128xf32> -> vector<8x128xf32>
    %c0_3 = arith.constant 0 : index
    %c0_4 = arith.constant 0 : index
    %3 = vector.load %arg3[%c0_3, %c0_4] : memref<1x128xf32, #tpu.memory_space<vmem>>, vector<1x128xf32>
    %4 = vector.broadcast %3 : vector<1x128xf32> to vector<8x128xf32>
    %5 = arith.addf %2, %4 : vector<8x128xf32>
    %6 = tpu.iota {dimensions = array<i32: 1>} : vector<8x128xi32>
    %c8_i32 = arith.constant 8 : i32
    %7 = vector.broadcast %c8_i32 : i32 to vector<8x128xi32>
    %8 = arith.cmpi slt, %6, %7 : vector<8x128xi32>
    %cst_5 = arith.constant 0xFF800000 : f32
    %9 = vector.broadcast %cst_5 : f32 to vector<8x128xf32>
    %10 = arith.select %8, %5, %9 : vector<8x128xi1>, vector<8x128xf32>
    %cst_6 = arith.constant dense<0xFF800000> : vector<8xf32>
    %11 = vector.multi_reduction <maximumf>, %10, %cst_6 [1] : vector<8x128xf32> to vector<8xf32>
    %12 = vector.shape_cast %11 : vector<8xf32> to vector<8x1xf32>
    %13 = vector.broadcast %12 : vector<8x1xf32> to vector<8x128xf32>
    %14 = arith.subf %10, %13 : vector<8x128xf32>
    %15 = math.exp %14 : vector<8x128xf32>
    %cst_7 = arith.constant dense<0.000000e+00> : vector<8xf32>
    %16 = vector.multi_reduction <add>, %15, %cst_7 [1] : vector<8x128xf32> to vector<8xf32>
    %17 = vector.shape_cast %16 : vector<8xf32> to vector<8x1xf32>
    %18 = tpu.reciprocal %17 : vector<8x1xf32> -> vector<8x1xf32>
    %19 = vector.broadcast %18 : vector<8x1xf32> to vector<8x128xf32>
    %20 = arith.mulf %15, %19 : vector<8x128xf32>
    %21 = arith.select %8, %20, %5 : vector<8x128xi1>, vector<8x128xf32>
    %c0_8 = arith.constant 0 : index
    %c0_9 = arith.constant 0 : index
    %22 = vector.load %arg4[%c0_8, %c0_9] : memref<8x128xf32, #tpu.memory_space<vmem>>, vector<8x128xf32>
    tpu.vector_store %arg4[%c0_8, %c0_9], %21 {strides = array<i32>} : memref<8x128xf32, #tpu.memory_space<vmem>>, vector<8x128xf32>,
    return
  }
  func.func @transform_0(%arg0: i32) -> (i32, i32) {
    %c0_i32 = arith.constant 0 : i32
    %c0_i32_0 = arith.constant 0 : i32
    return %arg0, %c0_i32 : i32, i32
  }
  func.func @transform_1(%arg0: i32) -> (i32, i32) {
    %c0_i32 = arith.constant 0 : i32
    %c0_i32_0 = arith.constant 0 : i32
    %c0_i32_1 = arith.constant 0 : i32
    return %c0_i32, %c0_i32_0 : i32, i32
  }
  func.func @transform_2(%arg0: i32) -> (i32, i32) {
    %c0_i32 = arith.constant 0 : i32
    %c0_i32_0 = arith.constant 0 : i32
    %c0_i32_1 = arith.constant 0 : i32
    return %c0_i32, %c0_i32_0 : i32, i32
  }
  func.func @transform_3(%arg0: i32) -> (i32, i32) {
    %c0_i32 = arith.constant 0 : i32
    %c0_i32_0 = arith.constant 0 : i32
    return %arg0, %c0_i32 : i32, i32
  }
}

</mosaic_0001>

<bundles_post_ra>
// kernel: fast_rcnn_outputs_forward.1
= control target key start
LH: loop header
LB: loop body
LE: loop exit
PB: predicated region body
PF: predicated region fallthrough
CT: control target
= control target key end

     0   :  { %8 = vsyncpa [#allocation3], 0  ;;  %s294_s0 = inlined_call_operand.hbm [shape: f32[8,32], index: 0, kind: input, shape index: {}]   ;;  %s295_s1 = inlined_call_operand.hbm [shape: f32[32,128], index: 1, kind: input, shape index: {}]   ;;  %s296_s2 = inlined_call_operand.vmem [shape: f32[1,128], index: 2, kind: input, shape index: {}]   ;;  %s297_s3 = inlined_call_operand.vmem [shape: f32[8,128], index: 3, kind: output, shape index: {}]  }
   0x1   :  { %9 = vsyncpa [#allocation5], 0  ;;  %s230_s12 = smov [#allocation2]   ;;  %s231_s14 = smov [#allocation4]  }
   0x2   :  { %s16_s13 = sshll.u32 %s230_s12, 4  ;;  %s25_s15 = sshll.u32 %s231_s14, 4  ;;  %s17_s13 = int_to_ptr.vmem [resolvable:$true] %s16_s13  ;;  %s257_s15 = int_to_ptr.vmem [resolvable:$true] %s25_s15 }
   0x3   :  { %s182_s18 = scalar_lea.hbm %s294_s0, 128 }
   0x4   :  { %p183_p0 = scmp.ne.s32.totalorder %s294_s0, %s182_s18  ;;  %p186_p1 = scmp.lt.u32.totalorder %s182_s18, %s294_s0 }
   0x6   :  { %p188_p2 = pnand %p186_p1, %p183_p0 }
   0x8   :  { %191 = shalt.err (!%p188_p2)
}
   0x9   :  { %s192_s23 = scalar_lea.vmem %s17_s13, 128  ;;  %p197_p4 = scmp.lt.s32.totalorder %s17_s13, %s17_s13 }
   0xa   :  { %p193_p3 = scmp.ne.s32.totalorder %s17_s13, %s192_s23  ;;  %p198_p5 = scmp.lt.s32.totalorder %s192_s23, %s192_s23 }
   0xc   :  { %p199_p6 = por %p198_p5, %p197_p4 }
   0xe   :  { %p200_p7 = pnand %p199_p6, %p193_p3 }
  0x10   :  { %203 = shalt.err (!%p200_p7)
}
  0x11   :  { %19 = dma.hbm_to_vmem [thread:$0]  %s294_s0, 128, %s17_s13, [#allocation3]  }
  0x12   :  { %s204_s28 = scalar_lea.hbm %s295_s1, 512 }
  0x13   :  { %p205_p8 = scmp.ne.s32.totalorder %s295_s1, %s204_s28  ;;  %p208_p9 = scmp.lt.u32.totalorder %s204_s28, %s295_s1 }
  0x15   :  { %p210_p10 = pnand %p208_p9, %p205_p8 }
  0x17   :  { %213 = shalt.err (!%p210_p10)
}
  0x18   :  { %s214_s6 = scalar_lea.vmem %s257_s15, 512  ;;  %p219_p12 = scmp.lt.s32.totalorder %s257_s15, %s257_s15 }
  0x19   :  { %p215_p11 = scmp.ne.s32.totalorder %s257_s15, %s214_s6  ;;  %p220_p13 = scmp.lt.s32.totalorder %s214_s6, %s214_s6 }
  0x1b   :  { %p221_p0 = por %p220_p13, %p219_p12 }
  0x1d   :  { %p222_p1 = pnand %p221_p0, %p215_p11 }
  0x1f   :  { %225 = shalt.err (!%p222_p1)
}
  0x20   :  { %s232_s0 = smov 128   ;;  %s233_s7 = smov 8  }
  0x21   :  { %31 = dma.hbm_to_vmem [thread:$0]  %s295_s1, 512, %s257_s15, [#allocation5], %s232_s0, %s232_s0, %s233_s7  }
  0x22   :  { %226 = dma.done.wait [#allocation3], 128  }
  0x23   :  { %227 = vsyncadd [#allocation3], 4294967168 }
  0x24   :  { %228 = dma.done.wait [#allocation5], 512  }
  0x25   :  { %229 = vsyncadd [#allocation5], 4294966784  ;;  %v234_v0 = vmov 0.0|0.0   ;;  %vm235_vm0 = vmmov 0   ;;  %v236_v1 = vmov 0.0   ;;  %v41_v2 = vld [vmem:[#allocation4] sm:$0xff]  ;;  %v126_v9 = vlaneseq }
  0x26   :  { %165 = vmatprep.subr.bf16.mxu0 %v234_v0  ;;  %162 = vmatprep.mubr.msk.f32.mxu0 %vm235_vm0, %v236_v1  ;;  %v42_v3 = vld [vmem:[#allocation4 + $0x8] sm:$0xff]  ;;  %v43_v4 = vld [vmem:[#allocation4 + $0x10] sm:$0xff]  ;;  %v44_v6 = vld [vmem:[#allocation4 + $0x18] sm:$0xff]  ;;  %vm52_vm1 = vcmask 261120  }
  0x27   :  { %v166_v5 = vpack.c.bf16 %v42_v3, %v41_v2  ;;  %v169_v7 = vpack.c.bf16 %v44_v6, %v43_v4  ;;  %v40_v8 = vld [vmem:[#allocation2] sm:$0xff]  ;;  %v127_v10 = vand.u32 127, %v126_v9 }
  0x28   :  { %v147_v11 = vld [vmem:[%s296_s2] ss:$0 sm:$0xff] }
  0x29   :  { %167 = vmatpush3.bf16.msra.mxu0 %v166_v5  ;;  %vm128_vm2 = vcmp.lt.s32.totalorder %v127_v10, 8 }
  0x2a   :  { %168 = vmatprep.subr.bf16.mxu0 %v234_v0 }
  0x2d   :  { %170 = vmatpush3.bf16.msra.mxu0 %v169_v7 }
  0x30   :  { %163 = vmatmul.mubr.msk.f32.vlgmr.msra.gmra.mrb[0].mxu0 %vm52_vm1, %v40_v8 }
 0x103   :  { %v122_v12 = vpop.f32.mrb[0].mxu0 }
 0x104   :  { %v123_v13 = vadd.f32 %v147_v11, %v122_v12  ;;  %v164_v14 = vpop.f32.mrb[1].mxu0 }
 0x106   :  { %v129_v15 = vsel %vm128_vm2, %v123_v13, -inf }
 0x107   :  { %130 = vmax.xlane.f32.xlu0 %v129_v15 }
 0x194   :  { %v131_v16 = vpop.xlane.xlu0 %130 }
 0x195   :  { %v132_v17 = vsub.f32 %v129_v15, %v131_v16 }
 0x197   :  { %v133_v18 = vmul.f32 1.442695, %v132_v17 }
 0x199   :  { %178 = vpow2.f32 %v133_v18 }
 0x1a3   :  { %v179_v19 = vpop.eup %178 }
 0x1a4   :  { %135 = vadd.xlane.f32.xlu0 %v179_v19 }
 0x231   :  { %v136_v20 = vpop.xlane.xlu0 %135 }
 0x232   :  { %180 = vrcp.f32 %v136_v20 }
 0x23c   :  { %v181_v21 = vpop.eup %180 }
 0x23d   :  { %v138_v22 = vmul.f32 %v181_v21, %v179_v19 }
 0x23f   :  { %v139_v23 = vsel %vm128_vm2, %v138_v22, %v123_v13 }
 0x240   :  { %140 = vst [vmem:[%s297_s3] sm:$0xff] %v139_v23 }
 0x241   :  { %145 = vsyncpa [#allocation3], 1 }
 0x242   :  { %146 = vsyncpa [#allocation5], 1 }

</bundles_post_ra>
